<compile_context>
chip_gen: v6e
topology: v6e:2x2x1
jax: 0.10.0
libtpu: 0.0.40
codegen_flags: <defaults>
</compile_context>

<pallas_src>
import functools

import jax
import jax.numpy as jnp
from jax import lax
from jax.experimental import pallas as pl
from jax.experimental.pallas import tpu as pltpu


def _round_up(x, m):
    return ((x + m - 1) // m) * m


def _single_tensorcore_chip():
    """Best-effort: True for 1-TensorCore chips (v5e/v6e) where a parallel split is pure overhead."""
    try:
        kind = jax.devices()[0].device_kind.lower()
    except Exception:
        return False
    return any(tag in kind for tag in ("v5 lite", "v5e", "v5litepod", "v6 lite", "v6e"))


def _cauchy_partial_kernel(x_ref, t_ref, out_ref, acc_ref, *,
                           inv_gamma, n_rows, block_rows, blocks_per_chunk, mask_rows):
    """Grid = (P parallel chunks, K sequential blocks per chunk).

    acc_ref: (8, LANES) f32 VMEM scratch, resident across the trailing axis.
    out_ref: (8, LANES) per-chunk partial sums of log1p(d^2 * inv_gamma).
    """
    i = pl.program_id(0)
    k = pl.program_id(1)

    @pl.when(k == 0)
    def _():
        acc_ref[...] = jnp.zeros_like(acc_ref)

    # Logical (unclamped) first row of this block.  For the repeat blocks of an uneven
    # chunk split this is >= n_rows, so the row mask zeroes the whole block's contribution.
    row0 = (i * blocks_per_chunk + k) * block_rows

    lanes = x_ref.shape[-1]
    n_slabs = block_rows // 8

    if mask_rows:
        # Hoisted once per block (JAX does not CSE broadcast_in_dim inside loops).
        sub_iota = lax.broadcasted_iota(jnp.int32, (8, lanes), 0)

    def slab_body(s, acc):
        r = s * 8
        r_hint = pl.multiple_of(r, 8)
        x = x_ref[pl.ds(r_hint, 8), :].astype(jnp.float32)
        t = t_ref[pl.ds(r_hint, 8), :].astype(jnp.float32)
        d = x - t
        if mask_rows:
            # Rows whose logical index >= n_rows (partial last block / repeated clamp block)
            # contribute log1p(0) == 0.
            limit = n_rows - row0 - r
            d = jnp.where(sub_iota < limit, d, 0.0)
        return acc + jnp.log1p(d * d * inv_gamma)

    unroll = 8 if (n_slabs % 8 == 0) else 1
    acc = lax.fori_loop(0, n_slabs, slab_body, acc_ref[...], unroll=unroll)
    acc_ref[...] = acc

    @pl.when(k == pl.num_programs(1) - 1)
    def _():
        out_ref[...] = acc_ref[...]


def cauchy_loss(inp, target, gamma=1.0, reduction="mean", *,
                lanes=1024, block_rows=1024, num_parallel=None):
    """Matches CauchyLoss.forward semantics for reduction in {'mean', 'sum', 'none'}."""
    assert inp.shape == target.shape
    gamma = float(gamma)
    inv_gamma = 1.0 / gamma

    if reduction == "none":
        # TODO(synk): 'none' path kept in plain JAX (pure elementwise, no reduction hot path);
        # computed in f32 and cast back to the input dtype.
        d = inp.astype(jnp.float32) - target.astype(jnp.float32)
        return (gamma * jnp.log1p(d * d * inv_gamma)).astype(inp.dtype)

    n_elems = int(inp.size)
    x_flat = inp.reshape(-1)       # contiguous reshape: free
    t_flat = target.reshape(-1)

    n_rows = n_elems // lanes
    tail = n_elems - n_rows * lanes

    # ---- tail (< lanes elements): plain JAX, negligible cost ----
    if tail:
        xt = x_flat[n_rows * lanes:].astype(jnp.float32)
        tt = t_flat[n_rows * lanes:].astype(jnp.float32)
        dt = xt - tt
        tail_sum = jnp.sum(jnp.log1p(dt * dt * inv_gamma))
    else:
        tail_sum = jnp.float32(0.0)

    if n_rows == 0:
        total = gamma * tail_sum
    else:
        if tail:
            # TODO(synk): for sizes not divisible by `lanes` this prefix slice still copies the
            # main body once; sizes divisible by `lanes` (the common case) are fully zero-copy.
            x_main = x_flat[: n_rows * lanes]
            t_main = t_flat[: n_rows * lanes]
        else:
            x_main = x_flat
            t_main = t_flat
        x2d = x_main.reshape(n_rows, lanes)   # free reshape
        t2d = t_main.reshape(n_rows, lanes)

        # Block rows: big blocks amortize the ~0.35us per-grid-step overhead; clamp for
        # small inputs.  Must be a multiple of 8 sublanes.
        br = min(block_rows, _round_up(n_rows, 8))
        br = max(8, (br // 8) * 8)
        num_blocks = pl.cdiv(n_rows, br)

        # Leading 'parallel' axis: p=2 always on multi-TensorCore chips (v7x); p=1 on
        # single-TC v5e/v6e where a split only adds init/writeback overhead.
        if num_parallel is None:
            num_parallel = 1 if _single_tensorcore_chip() else 2
        p = max(1, min(num_parallel, num_blocks))
        blocks_per_chunk = pl.cdiv(num_blocks, p)

        # Need the in-kernel row mask iff the last block is partial or chunks are uneven
        # (a clamped/repeated block whose logical rows all lie past n_rows).
        mask_rows = (n_rows % br != 0) or (num_blocks % p != 0)

        def in_map(i, k):
            # Clamp so repeated blocks of an uneven split stay in-bounds; their contribution
            # is zeroed by the row mask inside the kernel.
            return (jnp.minimum(i * blocks_per_chunk + k, num_blocks - 1), 0)

        kernel = functools.partial(
            _cauchy_partial_kernel,
            inv_gamma=inv_gamma,
            n_rows=n_rows,
            block_rows=br,
            blocks_per_chunk=blocks_per_chunk,
            mask_rows=mask_rows,
        )

        partials = pl.pallas_call(
            kernel,
            out_shape=jax.ShapeDtypeStruct((p, 8, lanes), jnp.float32),
            grid_spec=pltpu.PrefetchScalarGridSpec(
                num_scalar_prefetch=0,
                grid=(p, blocks_per_chunk),
                in_specs=[
                    pl.BlockSpec((br, lanes), in_map),
                    pl.BlockSpec((br, lanes), in_map),
                ],
                out_specs=pl.BlockSpec((None, 8, lanes), lambda i, k: (i, 0, 0)),
                scratch_shapes=[pltpu.VMEM((8, lanes), jnp.float32)],
            ),
            compiler_params=pltpu.CompilerParams(
                dimension_semantics=("parallel", "arbitrary"),
                # br=1024 f32: 2 inputs x 2 buffers x 4 MiB = 16 MiB; raise the scoped limit
                # (v5e default is 16 MiB) while staying well under v7x's 64 MiB physical VMEM.
                vmem_limit_bytes=40 << 20,
            ),
        )(x2d, t2d)

        # gamma scale hoisted out of the per-element hot loop (sum is linear).
        total = gamma * (jnp.sum(partials) + tail_sum)

    if reduction == "sum":
        return total
    # 'mean' (padding/masked rows contributed exactly 0; divide by the original count).
    return total / jnp.float32(n_elems)


if __name__ == "__main__":
    key = jax.random.PRNGKey(0)
    k1, k2 = jax.random.split(key)

    # 1) NCHW-like shape: batch=2, channels=4, spatial=16x16 (size % 1024 == 0 -> zero-copy path).
    x = jax.random.normal(k1, (2, 4, 16, 16), dtype=jnp.float32)
    t = jax.random.normal(k2, (2, 4, 16, 16), dtype=jnp.float32)
    out = jax.block_until_ready(cauchy_loss(x, t, gamma=1.0, reduction="mean"))
    d = x - t
    ref = jnp.mean(1.0 * jnp.log(1.0 + d * d / 1.0))
    assert jnp.allclose(out, ref, rtol=1e-5, atol=1e-6), (out, ref)

    # 2) Ragged size (7395 elements): exercises the JAX tail + partial-last-block row mask,
    #    'sum' reduction and gamma != 1.
    k3, k4 = jax.random.split(k1)
    x2 = jax.random.normal(k3, (3, 5, 17, 29), dtype=jnp.float32)
    t2 = jax.random.normal(k4, (3, 5, 17, 29), dtype=jnp.float32)
    out2 = jax.block_until_ready(cauchy_loss(x2, t2, gamma=2.0, reduction="sum"))
    d2 = x2 - t2
    ref2 = jnp.sum(2.0 * jnp.log(1.0 + d2 * d2 / 2.0))
    assert jnp.allclose(out2, ref2, rtol=1e-5, atol=1e-3), (out2, ref2)

    # 3) Forced multi-block / uneven 2-chunk split (clamped index_map + masked repeat block).
    k5, k6 = jax.random.split(k2)
    x3 = jax.random.normal(k5, (2, 4, 48, 64), dtype=jnp.float32)   # 24576 elems -> 24 rows
    t3 = jax.random.normal(k6, (2, 4, 48, 64), dtype=jnp.float32)
    out3 = jax.block_until_ready(
        cauchy_loss(x3, t3, gamma=0.5, reduction="sum", block_rows=8, num_parallel=2))
    d3 = x3 - t3
    ref3 = jnp.sum(0.5 * jnp.log(1.0 + d3 * d3 / 0.5))
    assert jnp.allclose(out3, ref3, rtol=1e-5, atol=1e-3), (out3, ref3)

    print("KERNEL_OK")
</pallas_src>

<mosaic_0001>
module attributes {stable_mosaic.version = 11 : i64} {
  func.func @_cauchy_partial_kernel(%arg0: i32, %arg1: i32, %arg2: memref<8x1024xf32, #tpu.memory_space<vmem>>, %arg3: memref<8x1024xf32, #tpu.memory_space<vmem>>, %arg4: memref<1x8x1024xf32, #tpu.memory_space<vmem>>, %arg5: memref<8x1024xf32, #tpu.memory_space<vmem>>) attributes {dimension_semantics = [#tpu.dimension_semantics<parallel>, #tpu.dimension_semantics<arbitrary>], iteration_bounds = array<i64: 1, 1>, scalar_prefetch = 0 : i64, scratch_operands = 1 : i64, tpu.core_type = #tpu.core_type<tc>, window_params = [{transform_indices = @transform_0, window_bounds = array<i64: 8, 1024>}, {transform_indices = @transform_1, window_bounds = array<i64: 8, 1024>}, {transform_indices = @transform_2, window_bounds = array<i64: 1, 8, 1024>}]} {
    %c0_i32 = arith.constant 0 : i32
    %0 = arith.cmpi eq, %arg1, %c0_i32 : i32
    %1 = arith.extui %0 : i1 to i32
    %c0_i32_0 = arith.constant 0 : i32
    %2 = arith.cmpi ne, %1, %c0_i32_0 : i32
    scf.if %2 {
      %cst_12 = arith.constant 0.000000e+00 : f32
      %30 = vector.broadcast %cst_12 : f32 to vector<8x1024xf32>
      %c0_13 = arith.constant 0 : index
      %c0_14 = arith.constant 0 : index
      %31 = vector.load %arg5[%c0_13, %c0_14] : memref<8x1024xf32, #tpu.memory_space<vmem>>, vector<8x1024xf32>
      tpu.vector_store %arg5[%c0_13, %c0_14], %30 {strides = array<i32>} : memref<8x1024xf32, #tpu.memory_space<vmem>>, vector<8x1024xf32>,
    } else {
    }
    %c1_i32 = arith.constant 1 : i32
    %3 = arith.muli %arg0, %c1_i32 : i32
    %4 = arith.addi %3, %arg1 : i32
    %c8_i32 = arith.constant 8 : i32
    %5 = arith.muli %4, %c8_i32 : i32
    %6 = tpu.iota {dimensions = array<i32: 0>} : vector<8x1024xi32>
    %c0 = arith.constant 0 : index
    %c0_1 = arith.constant 0 : index
    %7 = vector.load %arg5[%c0, %c0_1] : memref<8x1024xf32, #tpu.memory_space<vmem>>, vector<8x1024xf32>
    %c0_i32_2 = arith.constant 0 : i32
    %c8_i32_3 = arith.constant 8 : i32
    %8 = arith.muli %c0_i32_2, %c8_i32_3 : i32
    %9 = tpu.assume_multiple %8, 8 : i32
    %10 = arith.index_cast %9 : i32 to index
    %c0_4 = arith.constant 0 : index
    %11 = vector.load %arg2[%10, %c0_4] : memref<8x1024xf32, #tpu.memory_space<vmem>>, vector<8x1024xf32>
    %12 = arith.index_cast %9 : i32 to index
    %c0_5 = arith.constant 0 : index
    %13 = vector.load %arg3[%12, %c0_5] : memref<8x1024xf32, #tpu.memory_space<vmem>>, vector<8x1024xf32>
    %14 = arith.subf %11, %13 : vector<8x1024xf32>
    %c2_i32 = arith.constant 2 : i32
    %15 = arith.subi %c2_i32, %5 : i32
    %16 = arith.subi %15, %8 : i32
    %17 = vector.broadcast %16 : i32 to vector<8x1024xi32>
    %18 = arith.cmpi slt, %6, %17 : vector<8x1024xi32>
    %cst = arith.constant 0.000000e+00 : f32
    %19 = vector.broadcast %cst : f32 to vector<8x1024xf32>
    %20 = arith.select %18, %14, %19 : vector<8x1024xi1>, vector<8x1024xf32>
    %21 = arith.mulf %20, %20 : vector<8x1024xf32>
    %cst_6 = arith.constant 1.000000e+00 : f32
    %22 = vector.broadcast %cst_6 : f32 to vector<8x1024xf32>
    %23 = arith.mulf %21, %22 : vector<8x1024xf32>
    %24 = math.log1p %23 : vector<8x1024xf32>
    %25 = arith.addf %7, %24 : vector<8x1024xf32>
    %c1_i32_7 = arith.constant 1 : i32
    %c0_8 = arith.constant 0 : index
    %c0_9 = arith.constant 0 : index
    %26 = vector.load %arg5[%c0_8, %c0_9] : memref<8x1024xf32, #tpu.memory_space<vmem>>, vector<8x1024xf32>
    tpu.vector_store %arg5[%c0_8, %c0_9], %25 {strides = array<i32>} : memref<8x1024xf32, #tpu.memory_space<vmem>>, vector<8x1024xf32>,
    %c0_i32_10 = arith.constant 0 : i32
    %27 = arith.cmpi eq, %arg1, %c0_i32_10 : i32
    %28 = arith.extui %27 : i1 to i32
    %c0_i32_11 = arith.constant 0 : i32
    %29 = arith.cmpi ne, %28, %c0_i32_11 : i32
    scf.if %29 {
      %c0_12 = arith.constant 0 : index
      %c0_13 = arith.constant 0 : index
      %30 = vector.load %arg5[%c0_12, %c0_13] : memref<8x1024xf32, #tpu.memory_space<vmem>>, vector<8x1024xf32>
      %c0_14 = arith.constant 0 : index
      %c0_15 = arith.constant 0 : index
      %c0_16 = arith.constant 0 : index
      %31 = vector.load %arg4[%c0_14, %c0_15, %c0_16] : memref<1x8x1024xf32, #tpu.memory_space<vmem>>, vector<1x8x1024xf32>
      %32 = vector.shape_cast %31 : vector<1x8x1024xf32> to vector<8x1024xf32>
      %33 = vector.shape_cast %30 : vector<8x1024xf32> to vector<1x8x1024xf32>
      tpu.vector_store %arg4[%c0_14, %c0_15, %c0_16], %33 {strides = array<i32>} : memref<1x8x1024xf32, #tpu.memory_space<vmem>>, vector<1x8x1024xf32>,
    } else {
    }
    return
  }
  func.func @transform_0(%arg0: i32, %arg1: i32) -> (i32, i32) {
    %c1_i32 = arith.constant 1 : i32
    %0 = arith.muli %arg0, %c1_i32 : i32
    %1 = arith.addi %0, %arg1 : i32
    %c0_i32 = arith.constant 0 : i32
    %2 = arith.minsi %1, %c0_i32 : i32
    %c0_i32_0 = arith.constant 0 : i32
    %c0_i32_1 = arith.constant 0 : i32
    return %2, %c0_i32_0 : i32, i32
  }
  func.func @transform_1(%arg0: i32, %arg1: i32) -> (i32, i32) {
    %c1_i32 = arith.constant 1 : i32
    %0 = arith.muli %arg0, %c1_i32 : i32
    %1 = arith.addi %0, %arg1 : i32
    %c0_i32 = arith.constant 0 : i32
    %2 = arith.minsi %1, %c0_i32 : i32
    %c0_i32_0 = arith.constant 0 : i32
    %c0_i32_1 = arith.constant 0 : i32
    return %2, %c0_i32_0 : i32, i32
  }
  func.func @transform_2(%arg0: i32, %arg1: i32) -> (i32, i32, i32) {
    %c0_i32 = arith.constant 0 : i32
    %c0_i32_0 = arith.constant 0 : i32
    %c0_i32_1 = arith.constant 0 : i32
    return %arg0, %c0_i32, %c0_i32_0 : i32, i32, i32
  }
}

</mosaic_0001>

<bundles_post_ra>
// kernel: tpu_custom_call.1
= control target key start
LH: loop header
LB: loop body
LE: loop exit
PB: predicated region body
PF: predicated region fallthrough
CT: control target
= control target key end

     0   :  { %7 = vsyncpa [#allocation4], 0  ;;  %s533_s0 = inlined_call_operand.hbm [shape: f32[2,1024], index: 0, kind: input, shape index: {}]   ;;  %s534_s1 = inlined_call_operand.hbm [shape: f32[2,1024], index: 1, kind: input, shape index: {}]   ;;  %s535_s2 = inlined_call_operand.hbm [shape: f32[1,8,1024], index: 2, kind: output, shape index: {}]  }
   0x1   :  { %8 = vsyncpa [#allocation7], 0 }
   0x2   :  { %9 = vsyncpa [#allocation5], 0 }
   0x3   :  { %21 = vsyncadd [#allocation4], 768  ;;  %s453_s9 = smov [#allocation3]  }
   0x4   :  { %s27_s10 = sshll.u32 %s453_s9, 4  ;;  %s28_s10 = int_to_ptr.vmem [resolvable:$true] %s27_s10 }
   0x5   :  { %s395_s11 = scalar_lea.vmem %s28_s10, 256  ;;  %s399_s12 = scalar_lea.vmem %s28_s10, 1024 }
   0x6   :  { %p396_p0 = scmp.ne.s32.totalorder %s28_s10, %s395_s11  ;;  %p400_p1 = scmp.lt.s32.totalorder %s28_s10, %s28_s10 }
   0x7   :  { %p401_p2 = scmp.lt.s32.totalorder %s399_s12, %s395_s11 }
   0x9   :  { %p402_p3 = por %p401_p2, %p400_p1 }
   0xb   :  { %p403_p4 = pnand %p402_p3, %p396_p0 }
   0xd   :  { %406 = shalt.err (!%p403_p4)
}
   0xe   :  { %s454_s13 = smov 256   ;;  %s455_s14 = smov 16  }
   0xf   :  { %33 = dma.hbm_to_vmem [thread:$0]  %s533_s0, 256, %s28_s10, [#allocation4], %s454_s13, %s454_s13, %s455_s14  }
  0x10   :  { %45 = vsyncadd [#allocation7], 768  ;;  %s456_s17 = smov [#allocation6]  }
  0x11   :  { %s51_s18 = sshll.u32 %s456_s17, 4  ;;  %s52_s18 = int_to_ptr.vmem [resolvable:$true] %s51_s18 }
  0x12   :  { %s415_s19 = scalar_lea.vmem %s52_s18, 256  ;;  %s419_s20 = scalar_lea.vmem %s52_s18, 1024 }
  0x13   :  { %p416_p5 = scmp.ne.s32.totalorder %s52_s18, %s415_s19  ;;  %p420_p6 = scmp.lt.s32.totalorder %s52_s18, %s52_s18 }
  0x14   :  { %p421_p7 = scmp.lt.s32.totalorder %s419_s20, %s415_s19 }
  0x16   :  { %p422_p8 = por %p421_p7, %p420_p6 }
  0x18   :  { %p423_p9 = pnand %p422_p8, %p416_p5 }
  0x1a   :  { %426 = shalt.err (!%p423_p9)
}
  0x1b   :  { %57 = dma.hbm_to_vmem [thread:$0]  %s534_s1, 256, %s52_s18, [#allocation7], %s454_s13, %s454_s13, %s455_s14  }
  0x1c   :  { %447 = dma.done.wait [#allocation4], 1024  }
  0x1d   :  { %448 = vsyncadd [#allocation4], 4294966272 }
  0x1e   :  { %449 = dma.done.wait [#allocation7], 1024  }
  0x1f   :  { %450 = vsyncadd [#allocation7], 4294966272  ;;  %v92_v0 = vlaneseq  ;;  %v457_v1 = vmov 1983009808   ;;  %v105_v5 = vld [vmem:[#allocation3] sm:$0xff]  ;;  %v107_v6 = vld [vmem:[#allocation3 + $0x10] sm:$0xff] }
  0x20   :  { %v147_v2 = vunpack.c.l.s4 %v457_v1  ;;  %v109_v7 = vld [vmem:[#allocation3 + $0x20] sm:$0xff]  ;;  %v111_v8 = vld [vmem:[#allocation3 + $0x30] sm:$0xff]  ;;  %v106_v16 = vld [vmem:[#allocation3 + $0x8] sm:$0xff]  ;;  %s458_s0 = smov [#allocation8]  }
  0x21   :  { %v480_v3 = vshrl.u32 %v92_v0, 7  ;;  %v115_v9 = vld [vmem:[#allocation6] sm:$0xff]  ;;  %v117_v10 = vld [vmem:[#allocation6 + $0x10] sm:$0xff]  ;;  %v108_v19 = vld [vmem:[#allocation3 + $0x18] sm:$0xff]  ;;  %s351_s1 = sshll.u32 %s458_s0, 4  ;;  %s352_s1 = int_to_ptr.vmem [resolvable:$true] %s351_s1 }
  0x22   :  { %v148_v4 = vunpack.c.0.s8 %v147_v2  ;;  %v119_v11 = vld [vmem:[#allocation6 + $0x20] sm:$0xff]  ;;  %v121_v12 = vld [vmem:[#allocation6 + $0x30] sm:$0xff]  ;;  %v123_v13 = vsub.f32 %v105_v5, %v115_v9  ;;  %v125_v14 = vsub.f32 %v107_v6, %v117_v10  ;;  %v110_v20 = vld [vmem:[#allocation3 + $0x28] sm:$0xff]  ;;  %s427_s23 = scalar_lea.vmem %s352_s1, 1024  ;;  %p432_p11 = scmp.lt.s32.totalorder %s352_s1, %s352_s1 }
  0x23   :  { %v127_v17 = vsub.f32 %v109_v7, %v119_v11  ;;  %v129_v18 = vsub.f32 %v111_v8, %v121_v12  ;;  %v112_v21 = vld [vmem:[#allocation3 + $0x38] sm:$0xff]  ;;  %v116_v24 = vld [vmem:[#allocation6 + $0x8] sm:$0xff]  ;;  %vm133_vm0 = vcmp.lt.s32.totalorder %v480_v3, 2  ;;  %p428_p10 = scmp.ne.s32.totalorder %s352_s1, %s427_s23  ;;  %p433_p12 = scmp.lt.s32.totalorder %s427_s23, %s427_s23 }
  0x24   :  { %v151_v15 = vsub.s32 %v148_v4, %v480_v3  ;;  %v142_v22 = vcombine.low %v123_v13, %v125_v14  ;;  %v143_v23 = vcombine.high %v123_v13, %v125_v14  ;;  %v118_v25 = vld [vmem:[#allocation6 + $0x18] sm:$0xff]  ;;  %v120_v26 = vld [vmem:[#allocation6 + $0x28] sm:$0xff]  ;;  %v124_v30 = vsub.f32 %v106_v16, %v116_v24 }
  0x25   :  { %v144_v27 = vcombine.low %v127_v17, %v129_v18  ;;  %v145_v28 = vcombine.high %v127_v17, %v129_v18  ;;  %v122_v29 = vld [vmem:[#allocation6 + $0x38] sm:$0xff]  ;;  %v126_v31 = vsub.f32 %v108_v19, %v118_v25  ;;  %v128_v34 = vsub.f32 %v110_v20, %v120_v26  ;;  %p434_p13 = por %p433_p12, %p432_p11 }
  0x26   :  { %v152_v32 = vrot.slane %v142_v22, %v151_v15  ;;  %v159_v33 = vrot.slane %v143_v23, %v151_v15  ;;  %v130_v35 = vsub.f32 %v112_v21, %v122_v29 }
  0x27   :  { %v166_v36 = vrot.slane %v144_v27, %v151_v15  ;;  %v173_v37 = vrot.slane %v145_v28, %v151_v15  ;;  %v178_v38 = vcombine.low %v124_v30, %v126_v31  ;;  %v179_v39 = vcombine.high %v124_v30, %v126_v31  ;;  %p435_p0 = pnand %p434_p13, %p428_p10 }
  0x28   :  { %v180_v40 = vcombine.low %v128_v34, %v130_v35  ;;  %v181_v41 = vcombine.high %v128_v34, %v130_v35 }
  0x29   :  { %v174_v42 = vcombine.low %v152_v32, %v166_v36  ;;  %v175_v43 = vcombine.high %v152_v32, %v166_v36  ;;  %v176_v44 = vcombine.low %v159_v33, %v173_v37  ;;  %v177_v45 = vcombine.high %v159_v33, %v173_v37 }
  0x2a   :  { %v188_v46 = vrot.slane %v178_v38, %v151_v15  ;;  %v202_v47 = vrot.slane %v180_v40, %v151_v15  ;;  %v195_v48 = vrot.slane %v179_v39, %v151_v15  ;;  %v209_v56 = vrot.slane %v181_v41, %v151_v15 }
  0x2b   :  { %v222_v49 = vsel %vm133_vm0, %v174_v42, 0.0  ;;  %v223_v50 = vsel %vm133_vm0, %v175_v43, 0.0  ;;  %v224_v51 = vsel %vm133_vm0, %v176_v44, 0.0  ;;  %v225_v52 = vsel %vm133_vm0, %v177_v45, 0.0 }
  0x2c   :  { %v230_v53 = vmul.f32 %v222_v49, %v222_v49  ;;  %v231_v54 = vmul.f32 %v223_v50, %v223_v50  ;;  %v232_v55 = vmul.f32 %v224_v51, %v224_v51  ;;  %v233_v59 = vmul.f32 %v225_v52, %v225_v52 }
  0x2d   :  { %v210_v61 = vcombine.low %v188_v46, %v202_v47  ;;  %v211_v62 = vcombine.high %v188_v46, %v202_v47  ;;  %v212_v63 = vcombine.low %v195_v48, %v209_v56  ;;  %v213_v2 = vcombine.high %v195_v48, %v209_v56 }
  0x2e   :  { %v238_v57 = vadd.f32 1.0, %v230_v53  ;;  %v247_v58 = vadd.f32 1.0, %v231_v54  ;;  %v256_v60 = vadd.f32 1.0, %v232_v55  ;;  %v265_v0 = vadd.f32 1.0, %v233_v59 }
  0x2f   :  { %v241_v1 = vmul.f32 -0.5, %v230_v53  ;;  %v226_v4 = vsel %vm133_vm0, %v210_v61, 0.0  ;;  %v227_v5 = vsel %vm133_vm0, %v211_v62, 0.0  ;;  %v228_v6 = vsel %vm133_vm0, %v212_v63, 0.0 }
  0x30   :  { %371 = vlog2.f32 %v238_v57  ;;  %v250_v7 = vmul.f32 -0.5, %v231_v54  ;;  %v234_v8 = vmul.f32 %v226_v4, %v226_v4  ;;  %v235_v9 = vmul.f32 %v227_v5, %v227_v5 }
  0x31   :  { %373 = vlog2.f32 %v247_v58  ;;  %v259_v10 = vmul.f32 -0.5, %v232_v55  ;;  %v498_v11 = vmul.f32 %v228_v6, %v228_v6  ;;  %v242_v12 = vadd.f32 1.0, %v241_v1 }
  0x32   :  { %375 = vlog2.f32 %v256_v60  ;;  %v244_v13 = vand.u32 2147483647, %v230_v53  ;;  %v274_v14 = vadd.f32 1.0, %v234_v8  ;;  %v268_v15 = vmul.f32 -0.5, %v233_v59 }
  0x33   :  { %377 = vlog2.f32 %v265_v0  ;;  %v283_v16 = vadd.f32 1.0, %v235_v9  ;;  %v292_v17 = vadd.f32 1.0, %v498_v11  ;;  %v229_v18 = vsel %vm133_vm0, %v213_v2, 0.0 }
  0x34   :  { %v251_v19 = vadd.f32 1.0, %v250_v7  ;;  %379 = vlog2.f32 %v274_v14  ;;  %v253_v20 = vand.u32 2147483647, %v231_v54  ;;  %v260_v21 = vadd.f32 1.0, %v259_v10 }
  0x35   :  { %381 = vlog2.f32 %v283_v16  ;;  %v262_v22 = vand.u32 2147483647, %v232_v55  ;;  %v503_v23 = vmul.f32 %v229_v18, %v229_v18  ;;  %v243_v24 = vmul.f32 %v242_v12, %v230_v53 }
  0x36   :  { %383 = vlog2.f32 %v292_v17  ;;  %vm505_vm1 = vcmp.lt.f32.partialorder %v244_v13, 0.0004427343  ;;  %v269_v26 = vadd.f32 1.0, %v268_v15  ;;  %v252_v28 = vmul.f32 %v251_v19, %v231_v54 }
  0x37   :  { %v271_v29 = vand.u32 2147483647, %v233_v59  ;;  %v277_v3 = vmul.f32 -0.5, %v234_v8  ;;  %v301_v30 = vadd.f32 1.0, %v503_v23  ;;  %vm510_vm2 = vcmp.lt.f32.partialorder %v253_v20, 0.0004427343 }
  0x38   :  { %v261_v34 = vmul.f32 %v260_v21, %v232_v55  ;;  %v286_v35 = vmul.f32 -0.5, %v235_v9  ;;  %vm514_vm3 = vcmp.lt.f32.partialorder %v262_v22, 0.0004427343  ;;  %v295_v39 = vmul.f32 -0.5, %v498_v11 }
  0x39   :  { %385 = vlog2.f32 %v301_v30  ;;  %v270_v42 = vmul.f32 %v269_v26, %v233_v59  ;;  %vm272_vm4 = vcmp.lt.f32.partialorder %v271_v29, 0.0004427343  ;;  %v278_v45 = vadd.f32 1.0, %v277_v3 }
  0x3a   :  { %v280_v48 = vand.u32 2147483647, %v234_v8  ;;  %v287_v49 = vadd.f32 1.0, %v286_v35  ;;  %v289_v50 = vand.u32 2147483647, %v235_v9  ;;  %v296_v51 = vadd.f32 1.0, %v295_v39 }
  0x3b   :  { %v304_v52 = vmul.f32 -0.5, %v503_v23  ;;  %v298_v54 = vand.u32 2147483647, %v498_v11  ;;  %v279_v55 = vmul.f32 %v278_v45, %v234_v8  ;;  %v307_v0 = vand.u32 2147483647, %v503_v23 }
  0x3c   :  { %vm281_vm5 = vcmp.lt.f32.partialorder %v280_v48, 0.0004427343  ;;  %v288_v57 = vmul.f32 %v287_v49, %v235_v9  ;;  %vm290_vm6 = vcmp.lt.f32.partialorder %v289_v50, 0.0004427343  ;;  %v297_v60 = vmul.f32 %v296_v51, %v498_v11 }
  0x3d   :  { %v372_v27 = vpop.eup %371  ;;  %v305_v61 = vadd.f32 1.0, %v304_v52  ;;  %vm299_vm7 = vcmp.lt.f32.partialorder %v298_v54, 0.0004427343  ;;  %vm308_vm8 = vcmp.lt.f32.partialorder %v307_v0, 0.0004427343 }
  0x3e   :  { %v374_v31 = vpop.eup %373  ;;  %v240_v32 = vmul.f32 0.6931472, %v372_v27 }
  0x3f   :  { %v376_v36 = vpop.eup %375  ;;  %v249_v37 = vmul.f32 0.6931472, %v374_v31  ;;  %v306_v6 = vmul.f32 %v305_v61, %v503_v23 }
  0x40   :  { %v246_v40 = vsel %vm505_vm1, %v243_v24, %v240_v32  ;;  %v258_v41 = vmul.f32 0.6931472, %v376_v36  ;;  %v378_v43 = vpop.eup %377 }
  0x41   :  { %337 = vst [vmem:[#allocation8] sm:$0xff] %v246_v40  ;;  %v255_v44 = vsel %vm510_vm2, %v252_v28, %v249_v37  ;;  %v267_v47 = vmul.f32 0.6931472, %v378_v43  ;;  %v380_v56 = vpop.eup %379 }
  0x42   :  { %338 = vst [vmem:[#allocation8 + $0x8] sm:$0xff] %v255_v44  ;;  %v264_v46 = vsel %vm514_vm3, %v261_v34, %v258_v41  ;;  %v382_v58 = vpop.eup %381  ;;  %v276_v59 = vmul.f32 0.6931472, %v380_v56 }
  0x43   :  { %339 = vst [vmem:[#allocation8 + $0x10] sm:$0xff] %v264_v46  ;;  %v273_v53 = vsel %vm272_vm4, %v270_v42, %v267_v47  ;;  %v384_v62 = vpop.eup %383  ;;  %v285_v63 = vmul.f32 0.6931472, %v382_v58 }
  0x44   :  { %340 = vst [vmem:[#allocation8 + $0x18] sm:$0xff] %v273_v53  ;;  %v282_v1 = vsel %vm281_vm5, %v279_v55, %v276_v59  ;;  %v294_v2 = vmul.f32 0.6931472, %v384_v62 }
  0x45   :  { %341 = vst [vmem:[#allocation8 + $0x20] sm:$0xff] %v282_v1  ;;  %v291_v4 = vsel %vm290_vm6, %v288_v57, %v285_v63 }
  0x46   :  { %342 = vst [vmem:[#allocation8 + $0x28] sm:$0xff] %v291_v4  ;;  %v300_v5 = vsel %vm299_vm7, %v297_v60, %v294_v2  ;;  %v386_v7 = vpop.eup %385 }
  0x47   :  { %343 = vst [vmem:[#allocation8 + $0x30] sm:$0xff] %v300_v5  ;;  %v303_v8 = vmul.f32 0.6931472, %v386_v7 }
  0x49   :  { %v309_v9 = vsel %vm308_vm8, %v306_v6, %v303_v8 }
  0x4a   :  { %344 = vst [vmem:[#allocation8 + $0x38] sm:$0xff] %v309_v9 }
  0x4b   :  { %438 = shalt.err (!%p435_p0)
}
  0x4c   :  { %354 = dma.vmem_to_hbm [thread:$0]  %s352_s1, 1024, %s535_s2, [#allocation5]  }
  0x4d   :  { %451 = dma.done.wait [#allocation5], 1024  }
  0x4e   :  { %452 = vsyncadd [#allocation5], 4294966272 }
  0x4f   :  { %358 = vsyncpa [#allocation4], 1 }
  0x50   :  { %359 = vsyncpa [#allocation7], 1 }
  0x51   :  { %360 = vsyncpa [#allocation5], 1 }

</bundles_post_ra>
